<compile_context>
chip_gen: v6e
topology: v6e:2x2x1
jax: 0.10.0
libtpu: 0.0.40
codegen_flags: <defaults>
</compile_context>

<pallas_src>
import jax
import jax.numpy as jnp
from jax import lax
from jax.experimental import pallas as pl
from jax.experimental.pallas import tpu as pltpu


def _biaffine_kernel(x_ref, w_ref, y_ref, bq_ref, bk_ref, o_ref, xw_ref):
    # x_ref : [1, TQ, Dx]    (compute dtype)
    # w_ref : [1, Dx, Dy]    (compute dtype)
    # y_ref : [1, TK, Dy]    (compute dtype)
    # bq_ref: [1, 1, TQ, 1]  (f32)  query-side rank-1 bias (+ corner term)
    # bk_ref: [1, 1, 1, TK]  (f32)  key-side rank-1 bias
    # o_ref : [1, 1, TQ, TK] (out dtype)
    # xw_ref: [TQ, Dy] VMEM scratch, reused across the key-tile (kj) axis
    kj = pl.program_id(3)

    @pl.when(kj == 0)
    def _():
        xw = jnp.dot(x_ref[0], w_ref[0], preferred_element_type=jnp.float32)
        xw_ref[...] = xw.astype(xw_ref.dtype)

    yv = y_ref[0]
    if yv.dtype != xw_ref.dtype:           # only when xw_dtype != compute_dtype
        yv = yv.astype(xw_ref.dtype)
    # Contract on the feature axis of y directly (A·Bᵀ on the MXU, no
    # materialized transpose / XLU vxpose).
    s = lax.dot_general(
        xw_ref[...], yv,
        dimension_numbers=(((1,), (1,)), ((), ())),
        preferred_element_type=jnp.float32)                 # [TQ, TK] f32
    s = s + bq_ref[0, 0] + bk_ref[0, 0]                     # VPU adds in f32
    o_ref[0, 0] = s.astype(o_ref.dtype)


def _ceil_to(a, m):
    return -(-a // m) * m


def _fit_tile(t, dim, align):
    """Largest tile <= t that is either == dim or a multiple of `align`."""
    t = min(t, dim)
    if t < dim:
        t = max(align, (t // align) * align)
        if t >= dim:
            t = dim
    return t


def biaffine(x, y, weight, *, bias_x=True, bias_y=True,
             tq=512, tk=256,
             compute_dtype=jnp.bfloat16, xw_dtype=None, out_dtype=None,
             single_buffer_weight=None):
    """x: [B, S, x_features], y: [B, S, y_features],
    weight: [O, x_features+bias_x, y_features+bias_y] -> [B, O, S, S]
    (O axis squeezed if O == 1)."""
    B, S, Dx = x.shape
    O, DxW, DyW = weight.shape
    assert DxW == Dx + int(bias_x), (DxW, Dx, bias_x)
    Dy = DyW - int(bias_y)
    assert y.shape == (B, S, Dy), (y.shape, (B, S, Dy))

    out_dtype = x.dtype if out_dtype is None else jnp.dtype(out_dtype)
    xw_dtype = jnp.dtype(compute_dtype) if xw_dtype is None else jnp.dtype(xw_dtype)

    # ---- tile selection ----------------------------------------------------
    tq = _fit_tile(tq, S, 8)      # sublane dim of x / bq / out blocks
    tk = _fit_tile(tk, S, 128)    # lane dim of bk / out blocks
    # v7x has 2 TensorCores: keep >= 2 parallel blocks so one core never idles.
    if B * O * pl.cdiv(S, tq) < 2:
        half = _ceil_to(-(-S // 2), 8)
        if half < S:
            tq = half
    nq = pl.cdiv(S, tq)
    nk = pl.cdiv(S, tk)

    # ---- bias decomposition (replaces the ones-column concat) --------------
    #   s = x·Wc·yᵀ + (x·wcol)·1ᵀ + 1·(wrow·yᵀ) + w00
    w_core = weight[:, :Dx, :Dy]                                   # [O, Dx, Dy]
    if bias_y:
        bq = jnp.einsum('bsd,od->bos', x, weight[:, :Dx, Dy])      # x · wcol
    else:
        bq = jnp.zeros((B, O, S), x.dtype)
    if bias_x:
        bk = jnp.einsum('bsd,od->bos', y, weight[:, Dx, :Dy])      # wrow · y
        if bias_y:
            bq = bq + weight[:, Dx, Dy][None, :, None]             # + corner
    else:
        bk = jnp.zeros((B, O, S), x.dtype)
    bq = bq.astype(jnp.float32).reshape(B, O, S, 1)
    bk = bk.astype(jnp.float32).reshape(B, O, 1, S)

    # ---- MXU-dtype inputs (halves DMA bytes, 2-4x MXU throughput) ----------
    xc = x.astype(compute_dtype)
    yc = y.astype(compute_dtype)
    wc = w_core.astype(compute_dtype)
    cbytes = jnp.dtype(compute_dtype).itemsize
    obytes = jnp.dtype(out_dtype).itemsize
    xwbytes = xw_dtype.itemsize

    # ---- weight buffering: W's block index only changes with o (outermost),
    # so double-buffering a large weight tile only wastes VMEM (v7x!). -------
    if single_buffer_weight is None:
        single_buffer_weight = Dx * Dy * cbytes > (1 << 20)
    w_spec_kwargs = {}
    if single_buffer_weight:
        w_spec_kwargs["pipeline_mode"] = pl.Buffered(1)
    w_spec = pl.BlockSpec((1, Dx, Dy), lambda o, b, qi, kj: (o, 0, 0),
                          **w_spec_kwargs)

    # ---- scheduler hint: actual pipeline traffic ----------------------------
    flops = 2 * B * O * S * Dx * Dy + 2 * B * O * S * S * Dy
    bytes_accessed = int(
        O * B * nq * tq * Dx * cbytes          # x (re-fetched per (o, qi))
        + O * Dx * Dy * cbytes                 # W (o outermost -> O fetches)
        + O * B * nq * nk * tk * Dy * cbytes   # y (re-streamed per (o, b, qi))
        + O * B * nq * tq * 4                  # bq
        + O * B * nq * nk * tk * 4             # bk
        + B * O * S * S * obytes)              # output
    cost = pl.CostEstimate(flops=int(flops), transcendentals=0,
                           bytes_accessed=bytes_accessed)

    # ---- VMEM footprint (lane-padded blocks, double-buffered) --------------
    lane = 128
    x_blk = tq * _ceil_to(Dx, lane) * cbytes
    w_blk = _ceil_to(Dx, 8) * _ceil_to(Dy, lane) * cbytes
    y_blk = tk * _ceil_to(Dy, lane) * cbytes
    bq_blk = tq * lane * 4                     # (tq, 1) f32 pads to (tq, 128)
    bk_blk = 8 * _ceil_to(tk, lane) * 4        # (1, tk) f32 pads to (8, tk)
    o_blk = tq * _ceil_to(tk, lane) * obytes
    xw_scr = tq * _ceil_to(Dy, lane) * xwbytes
    w_bufs = 1 if single_buffer_weight else 2
    needed = (2 * (x_blk + y_blk + bq_blk + bk_blk + o_blk)
              + w_bufs * w_blk + xw_scr + (1 << 20))

    cp_kwargs = dict(
        dimension_semantics=("parallel", "parallel", "parallel", "arbitrary"))
    # v5e scoped-VMEM default is 16 MiB (v6e/v7x: 32 MiB); set an explicit
    # limit whenever we might exceed the smallest default.
    if needed > (16 << 20):
        cp_kwargs["vmem_limit_bytes"] = int(min(needed + needed // 2, 128 << 20))

    out = pl.pallas_call(
        _biaffine_kernel,
        out_shape=jax.ShapeDtypeStruct((B, O, S, S), out_dtype),
        grid_spec=pltpu.PrefetchScalarGridSpec(
            num_scalar_prefetch=0,
            grid=(O, B, nq, nk),          # o outermost: W fetched only O times
            in_specs=[
                pl.BlockSpec((1, tq, Dx), lambda o, b, qi, kj: (b, qi, 0)),
                w_spec,
                pl.BlockSpec((1, tk, Dy), lambda o, b, qi, kj: (b, kj, 0)),
                pl.BlockSpec((1, 1, tq, 1), lambda o, b, qi, kj: (b, o, qi, 0)),
                pl.BlockSpec((1, 1, 1, tk), lambda o, b, qi, kj: (b, o, 0, kj)),
            ],
            out_specs=pl.BlockSpec((1, 1, tq, tk),
                                   lambda o, b, qi, kj: (b, o, qi, kj)),
            scratch_shapes=[pltpu.VMEM((tq, Dy), xw_dtype)],
        ),
        compiler_params=pltpu.CompilerParams(**cp_kwargs),
        cost_estimate=cost,
    )(xc, wc, yc, bq, bk)

    if O == 1:
        out = jnp.squeeze(out, axis=1)
    return out


def _ref_biaffine(x, y, weight, bias_x, bias_y):
    xb = jnp.concatenate([x, jnp.ones_like(x[..., :1])], -1) if bias_x else x
    yb = jnp.concatenate([y, jnp.ones_like(y[..., :1])], -1) if bias_y else y
    return jnp.einsum('bxi,oij,byj->boxy', xb, weight, yb)


if __name__ == "__main__":
    # Small, deterministic problem: batch=2, seq=8, x_features=32,
    # y_features=32, out_features=2, bias_x=bias_y=True.
    B, S, XF, YF, O = 2, 8, 32, 32, 2

    key = jax.random.PRNGKey(0)
    kx, ky, kw = jax.random.split(key, 3)
    x = jax.random.normal(kx, (B, S, XF), dtype=jnp.float32)
    y = jax.random.normal(ky, (B, S, YF), dtype=jnp.float32)
    # The torch module zero-inits the weight; use a deterministic random
    # weight instead so the kernel computes something non-trivial.
    weight = jax.random.normal(kw, (O, XF + 1, YF + 1), dtype=jnp.float32) * 0.1
    ref = _ref_biaffine(x, y, weight, True, True)

    # f32 MXU path — tight tolerance.
    out_f32 = jax.block_until_ready(
        biaffine(x, y, weight, compute_dtype=jnp.float32))
    assert out_f32.shape == ref.shape and out_f32.dtype == ref.dtype
    assert jnp.allclose(out_f32, ref, atol=2e-3, rtol=2e-3)

    # bf16 MXU path (default) with bf16 output stream (out_dtype knob).
    out_bf16 = jax.block_until_ready(
        biaffine(x, y, weight, out_dtype=jnp.bfloat16))
    assert out_bf16.shape == ref.shape and out_bf16.dtype == jnp.bfloat16
    assert jnp.allclose(out_bf16.astype(jnp.float32), ref,
                        atol=2.5e-1, rtol=1e-1)

    # O == 1 squeeze path.
    w1 = weight[:1]
    out1 = jax.block_until_ready(
        biaffine(x, y, w1, compute_dtype=jnp.float32))
    ref1 = _ref_biaffine(x, y, w1, True, True)[:, 0]
    assert out1.shape == (B, S, S), out1.shape
    assert jnp.allclose(out1, ref1, atol=2e-3, rtol=2e-3)

    # bias_y=False branch (key-side rank-1 bias only, no corner term).
    w_nby = jax.random.normal(jax.random.PRNGKey(1), (O, XF + 1, YF),
                              dtype=jnp.float32) * 0.1
    out_nby = jax.block_until_ready(
        biaffine(x, y, w_nby, bias_x=True, bias_y=False,
                 compute_dtype=jnp.float32))
    ref_nby = _ref_biaffine(x, y, w_nby, True, False)
    assert jnp.allclose(out_nby, ref_nby, atol=2e-3, rtol=2e-3)

    # Ragged S (S % tq != 0) + dual-TC parallel-extent cap (B = O = 1):
    # tq is shrunk to 8 so the parallel grid keeps >= 2 blocks, and the last
    # query tile is a ragged edge that Pallas clips on store.
    Br, Sr, XFr, YFr = 1, 12, 24, 40
    kxr, kyr, kwr = jax.random.split(jax.random.PRNGKey(2), 3)
    xr = jax.random.normal(kxr, (Br, Sr, XFr), dtype=jnp.float32)
    yr = jax.random.normal(kyr, (Br, Sr, YFr), dtype=jnp.float32)
    wr = jax.random.normal(kwr, (1, XFr + 1, YFr + 1), dtype=jnp.float32) * 0.1
    out_r = jax.block_until_ready(
        biaffine(xr, yr, wr, compute_dtype=jnp.float32))
    ref_r = _ref_biaffine(xr, yr, wr, True, True)[:, 0]
    assert out_r.shape == (Br, Sr, Sr), out_r.shape
    assert jnp.allclose(out_r, ref_r, atol=2e-3, rtol=2e-3)

    print("KERNEL_OK")
</pallas_src>

<mosaic_0001>
module attributes {stable_mosaic.version = 11 : i64} {
  func.func @_biaffine_kernel(%arg0: i32, %arg1: i32, %arg2: i32, %arg3: i32, %arg4: memref<1x8x32xf32, #tpu.memory_space<vmem>>, %arg5: memref<1x32x32xf32, #tpu.memory_space<vmem>>, %arg6: memref<1x8x32xf32, #tpu.memory_space<vmem>>, %arg7: memref<1x1x8x1xf32, #tpu.memory_space<vmem>>, %arg8: memref<1x1x1x8xf32, #tpu.memory_space<vmem>>, %arg9: memref<1x1x8x8xf32, #tpu.memory_space<vmem>>, %arg10: memref<8x32xf32, #tpu.memory_space<vmem>>) attributes {dimension_semantics = [#tpu.dimension_semantics<parallel>, #tpu.dimension_semantics<parallel>, #tpu.dimension_semantics<parallel>, #tpu.dimension_semantics<arbitrary>], iteration_bounds = array<i64: 2, 2, 1, 1>, scalar_prefetch = 0 : i64, scratch_operands = 1 : i64, tpu.core_type = #tpu.core_type<tc>, window_params = [{transform_indices = @transform_0, window_bounds = array<i64: 1, 8, 32>}, {transform_indices = @transform_1, window_bounds = array<i64: 1, 32, 32>}, {transform_indices = @transform_2, window_bounds = array<i64: 1, 8, 32>}, {transform_indices = @transform_3, window_bounds = array<i64: 1, 1, 8, 1>}, {transform_indices = @transform_4, window_bounds = array<i64: 1, 1, 1, 8>}, {transform_indices = @transform_5, window_bounds = array<i64: 1, 1, 8, 8>}]} {
    %c0_i32 = arith.constant 0 : i32
    %0 = arith.cmpi eq, %arg3, %c0_i32 : i32
    %1 = arith.extui %0 : i1 to i32
    %c0_i32_0 = arith.constant 0 : i32
    %2 = arith.cmpi ne, %1, %c0_i32_0 : i32
    scf.if %2 {
      %c0_17 = arith.constant 0 : index
      %c0_18 = arith.constant 0 : index
      %c0_19 = arith.constant 0 : index
      %18 = vector.load %arg4[%c0_17, %c0_18, %c0_19] : memref<1x8x32xf32, #tpu.memory_space<vmem>>, vector<1x8x32xf32>
      %19 = vector.shape_cast %18 : vector<1x8x32xf32> to vector<8x32xf32>
      %c0_20 = arith.constant 0 : index
      %c0_21 = arith.constant 0 : index
      %c0_22 = arith.constant 0 : index
      %20 = vector.load %arg5[%c0_20, %c0_21, %c0_22] : memref<1x32x32xf32, #tpu.memory_space<vmem>>, vector<1x32x32xf32>
      %21 = vector.shape_cast %20 : vector<1x32x32xf32> to vector<32x32xf32>
      %cst_23 = arith.constant dense<0.000000e+00> : vector<8x32xf32>
      %22 = tpu.matmul %19, %21, %cst_23 {dimension_numbers = #tpu.dot_dimension_numbers<[1], [0], [0], [1], [0, 0, 1, 1], [], []>} : vector<8x32xf32>, vector<32x32xf32>, vector<8x32xf32> -> vector<8x32xf32>
      %c0_24 = arith.constant 0 : index
      %c0_25 = arith.constant 0 : index
      %23 = vector.load %arg10[%c0_24, %c0_25] : memref<8x32xf32, #tpu.memory_space<vmem>>, vector<8x32xf32>
      tpu.vector_store %arg10[%c0_24, %c0_25], %22 {strides = array<i32>} : memref<8x32xf32, #tpu.memory_space<vmem>>, vector<8x32xf32>,
    } else {
    }
    %c0 = arith.constant 0 : index
    %c0_1 = arith.constant 0 : index
    %c0_2 = arith.constant 0 : index
    %3 = vector.load %arg6[%c0, %c0_1, %c0_2] : memref<1x8x32xf32, #tpu.memory_space<vmem>>, vector<1x8x32xf32>
    %4 = vector.shape_cast %3 : vector<1x8x32xf32> to vector<8x32xf32>
    %c0_3 = arith.constant 0 : index
    %c0_4 = arith.constant 0 : index
    %5 = vector.load %arg10[%c0_3, %c0_4] : memref<8x32xf32, #tpu.memory_space<vmem>>, vector<8x32xf32>
    %cst = arith.constant dense<0.000000e+00> : vector<8x8xf32>
    %6 = tpu.matmul %5, %4, %cst {dimension_numbers = #tpu.dot_dimension_numbers<[1], [1], [0], [0], [0, 0, 1, 0], [], []>} : vector<8x32xf32>, vector<8x32xf32>, vector<8x8xf32> -> vector<8x8xf32>
    %c0_5 = arith.constant 0 : index
    %c0_6 = arith.constant 0 : index
    %c0_7 = arith.constant 0 : index
    %c0_8 = arith.constant 0 : index
    %7 = vector.load %arg7[%c0_5, %c0_6, %c0_7, %c0_8] : memref<1x1x8x1xf32, #tpu.memory_space<vmem>>, vector<1x1x8x1xf32>
    %8 = vector.shape_cast %7 : vector<1x1x8x1xf32> to vector<8x1xf32>
    %9 = vector.broadcast %8 : vector<8x1xf32> to vector<8x8xf32>
    %10 = arith.addf %6, %9 : vector<8x8xf32>
    %c0_9 = arith.constant 0 : index
    %c0_10 = arith.constant 0 : index
    %c0_11 = arith.constant 0 : index
    %c0_12 = arith.constant 0 : index
    %11 = vector.load %arg8[%c0_9, %c0_10, %c0_11, %c0_12] : memref<1x1x1x8xf32, #tpu.memory_space<vmem>>, vector<1x1x1x8xf32>
    %12 = vector.shape_cast %11 : vector<1x1x1x8xf32> to vector<1x8xf32>
    %13 = vector.broadcast %12 : vector<1x8xf32> to vector<8x8xf32>
    %14 = arith.addf %10, %13 : vector<8x8xf32>
    %c0_13 = arith.constant 0 : index
    %c0_14 = arith.constant 0 : index
    %c0_15 = arith.constant 0 : index
    %c0_16 = arith.constant 0 : index
    %15 = vector.load %arg9[%c0_13, %c0_14, %c0_15, %c0_16] : memref<1x1x8x8xf32, #tpu.memory_space<vmem>>, vector<1x1x8x8xf32>
    %16 = vector.shape_cast %15 : vector<1x1x8x8xf32> to vector<8x8xf32>
    %17 = vector.shape_cast %14 : vector<8x8xf32> to vector<1x1x8x8xf32>
    tpu.vector_store %arg9[%c0_13, %c0_14, %c0_15, %c0_16], %17 {strides = array<i32>} : memref<1x1x8x8xf32, #tpu.memory_space<vmem>>, vector<1x1x8x8xf32>,
    return
  }
  func.func @transform_0(%arg0: i32, %arg1: i32, %arg2: i32, %arg3: i32) -> (i32, i32, i32) {
    %c0_i32 = arith.constant 0 : i32
    %c0_i32_0 = arith.constant 0 : i32
    return %arg1, %arg2, %c0_i32 : i32, i32, i32
  }
  func.func @transform_1(%arg0: i32, %arg1: i32, %arg2: i32, %arg3: i32) -> (i32, i32, i32) {
    %c0_i32 = arith.constant 0 : i32
    %c0_i32_0 = arith.constant 0 : i32
    %c0_i32_1 = arith.constant 0 : i32
    return %arg0, %c0_i32, %c0_i32_0 : i32, i32, i32
  }
  func.func @transform_2(%arg0: i32, %arg1: i32, %arg2: i32, %arg3: i32) -> (i32, i32, i32) {
    %c0_i32 = arith.constant 0 : i32
    %c0_i32_0 = arith.constant 0 : i32
    return %arg1, %arg3, %c0_i32 : i32, i32, i32
  }
  func.func @transform_3(%arg0: i32, %arg1: i32, %arg2: i32, %arg3: i32) -> (i32, i32, i32, i32) {
    %c0_i32 = arith.constant 0 : i32
    %c0_i32_0 = arith.constant 0 : i32
    return %arg1, %arg0, %arg2, %c0_i32 : i32, i32, i32, i32
  }
  func.func @transform_4(%arg0: i32, %arg1: i32, %arg2: i32, %arg3: i32) -> (i32, i32, i32, i32) {
    %c0_i32 = arith.constant 0 : i32
    %c0_i32_0 = arith.constant 0 : i32
    return %arg1, %arg0, %c0_i32, %arg3 : i32, i32, i32, i32
  }
  func.func @transform_5(%arg0: i32, %arg1: i32, %arg2: i32, %arg3: i32) -> (i32, i32, i32, i32) {
    %c0_i32 = arith.constant 0 : i32
    return %arg1, %arg0, %arg2, %arg3 : i32, i32, i32, i32
  }
}

</mosaic_0001>

<bundles_post_ra>
// kernel: tpu_custom_call.1
= control target key start
LH: loop header
LB: loop body
LE: loop exit
PB: predicated region body
PF: predicated region fallthrough
CT: control target
= control target key end

     0   :  { %s1310_s0 = inlined_call_operand.vmem [shape: f32[2,8,32], index: 0, kind: input, shape index: {}]   ;;  %s1311_s1 = inlined_call_operand.hbm [shape: f32[2,32,32], index: 1, kind: input, shape index: {}]   ;;  %s1312_s2 = inlined_call_operand.vmem [shape: f32[2,8,32], index: 2, kind: input, shape index: {}]   ;;  %s1313_s3 = inlined_call_operand.vmem [shape: f32[2,2,8,1], index: 3, kind: input, shape index: {}]   ;;  %s1314_s4 = inlined_call_operand.vmem [shape: f32[2,2,1,8], index: 4, kind: input, shape index: {}]   ;;  %s1315_s5 = inlined_call_operand.hbm [shape: f32[2,2,8,8], index: 5, kind: output, shape index: {}]  }
   0x1   :  { %1321 = sst [smem:[#allocation13_spill]] %s1315_s5 }
   0x2   :  { %10 = vsyncpa [#allocation4], 0 }
   0x3   :  { %12 = vsyncpa [#allocation4 + $0x1], 0 }
   0x4   :  { %13 = vsyncpa [#allocation5], 0 }
   0x5   :  { %15 = vsyncpa [#allocation5 + $0x1], 0  ;;  %s1112_s18 = smov 0   ;;  %s1114_s19 = smov 0  }
   0x6   :  { %s1116_s20 = smov 0   ;;  %s1118_s21 = smov 0  }
   0x7   :  { %s1120_s22 = smov 0   ;;  %s1122_s23 = smov 0  }
   0x8   :  { %s1124_s24 = smov 0   ;;  %s1126_s25 = smov 0  }
   0x9   :  { %s1128_s26 = smov 0   ;;  %s1130_s27 = smov 0  }
   0xa   :  { %s1132_s28 = smov 0  }
   0xb LB: > { %1322 = sst [smem:[#allocation9_spill]] %s1065_s26  ;;  %s769_s29 = sadd.s32 4294967295, %s1073_s28   ;;  %s1073_s28 = sphi %s1132_s28, %s21_s28   ;;  %s1069_s27 = sphi %s1130_s27, %s1335_s27   ;;  %s1065_s26 = sphi %s1128_s26, %s1334_s26   ;;  %s1061_s25 = sphi %s1126_s25, %s1333_s25   ;;  %s1057_s24 = sphi %s1124_s24, %s1332_s24   ;;  %s1053_s23 = sphi %s1122_s23, %s1341_s23   ;;  %s1049_s22 = sphi %s1120_s22, %s1340_s22   ;;  %s1045_s21 = sphi %s1118_s21, %s1339_s21   ;;  %s1041_s20 = sphi %s1116_s20, %s1338_s20   ;;  %s1037_s19 = sphi %s1114_s19, %s1337_s19   ;;  %s1033_s18 = sphi %s1112_s18, %s1336_s18  }
   0xc   : > { %1323 = sst [smem:[#allocation10_spill]] %s1069_s27  ;;  %s770_s30 = sadd.s32 4294967294, %s1073_s28  }
   0xd   : > { %s43_s6 = sadd.s32 1, %s1065_s26  ;;  %s47_s7 = sadd.s32 1, %s1069_s27 }
   0xe   : > { %p45_p0 = scmp.ge.s32.totalorder %s43_s6, 2  ;;  %s82_s8 = sadd.s32 1, %s1053_s23 }
   0xf   : > { %p89_p1 = scmp.ne.s32.totalorder %s1053_s23, %s1049_s22  ;;  %p90_p2 = scmp.eq.s32.totalorder %s1073_s28, 0 }
  0x10   : > { %s1343_s6 = smov (%p45_p0, %s43_s6), 0  ;;  %s1345_s7 = smov (!%p45_p0, %s47_s7), %s1069_s27 }
  0x11   : > { %1324 = sst [smem:[#allocation11_spill]] %s1343_s6  ;;  %p1176_p3 = por %p90_p2, %p89_p1 }
  0x12   : > { %p95_p4 = scmp.ne.s32.totalorder %s1049_s22, %s1045_s21  ;;  %p49_p5 = scmp.ge.s32.totalorder %s1345_s7, 2 }
  0x13   : > { %p96_p6 = scmp.eq.s32.totalorder %s769_s29, 0  ;;  %s193_s10 = ssub.s32 %s1065_s26, %s1343_s6 }
  0x14   : > { %s202_s11 = sadd.s32 1, %s1041_s20  ;;  %s1347_s7 = smov (%p49_p5, %s1345_s7), 0 }
  0x15   : > { %1326 = sst [smem:[#allocation12_spill]] %s1347_s7  ;;  %p1186_p7 = por %p96_p6, %p95_p4 }
  0x16   : > { %p212_p8 = scmp.ne.s32.totalorder %s1041_s20, %s1037_s19  ;;  %s79_s13 = ssub.s32 %s1069_s27, %s1347_s7 }
  0x17   : > { %p213_p9 = scmp.eq.s32.totalorder %s769_s29, 3  ;;  %p80_p10 = scmp.eq.s32.totalorder %s79_s13, 0 }
  0x18   : > { %s195_s14 = sor.u32 %s193_s10, %s79_s13  ;;  %p218_p13 = scmp.ne.s32.totalorder %s1037_s19, %s1033_s18 }
  0x19   : > { %p200_p11 = scmp.eq.s32.totalorder %s195_s14, 0  ;;  %p1194_p12 = por %p213_p9, %p212_p8 }
  0x1a   : > { %s1199_s16 = scalar_select %p80_p10, %s1053_s23, %s82_s8  }
  0x1b   : > { %s1202_s17 = scalar_select %p200_p11, %s1041_s20, %s202_s11  }
  0x1c   : > { %p219_p0 = scmp.eq.s32.totalorder %s770_s30, 3  ;;  %p829_p1 = scmp.lt.s32.totalorder %s1073_s28, 4 }
  0x1d   : > { %s249_s29 = sand.u32 1, %s1053_s23   ;;  %s793_s13 = sshll.u32 %s1069_s27, 9 }
  0x1e   : > { %p1207_p2 = por %p219_p0, %p218_p13  ;;  %s773_s10 = sshll.u32 %s249_s29, 5 }
  0x1f   : > { %s259_s6 = scalar_lea.hbm %s1311_s1, %s793_s13  ;;  %s253_s26 = scalar_lea.vmem [#allocation3], %s773_s10 }
  0x20   : > { %s260_s5 = sshll.u32 %s253_s26, 4  ;;  %p1218_p4 = pnand %p829_p1, %p1176_p3  ;;  %s261_s5 = int_to_ptr.vmem [resolvable:$true] %s260_s5 }
  0x21   : > { %p776_p5 = scmp.ge.s32.totalorder %s1073_s28, 1  ;;  %s250_s30 = scalar_lea.sflag [#allocation4], %s249_s29 }
  0x22   : > { %p927_p6 = pneg %p1218_p4  ;;  %s938_s11 = scalar_lea.vmem %s261_s5, 512 }
  0x23   : > { %p939_p8 = scmp.ne.s32.totalorder %s261_s5, %s938_s11  ;;  %s1075_s27 = smov [#allocation3]  }
  0x24   : > { %s943_s7 = sshll.u32 %s1075_s27, 4  ;;  %s944_s7 = int_to_ptr.vmem [resolvable:$false] %s943_s7 }
  0x25   : > { %p941_p9 = pnand %p939_p8, %p927_p6  ;;  %s945_s10 = scalar_lea.vmem %s944_s7, 1024 }
  0x26   : > { %p946_p11 = scmp.lt.s32.totalorder %s261_s5, %s944_s7  ;;  %p947_p13 = scmp.lt.s32.totalorder %s945_s10, %s938_s11 }
  0x27   : > { %p942_p10 = pneg %p941_p9 }
  0x28   : > { %p948_p0 = por %p947_p13, %p946_p11 }
  0x2a   : > { %p949_p3 = pnand %p948_p0, %p942_p10 }
  0x2c   : > { %952 = shalt.err (!%p949_p3)
}
  0x2d   : > { %s1076_s26 = smov 128   ;;  %s1077_s9 = smov 8  }
  0x2e   : > { %824 = dma.hbm_to_vmem [thread:$0]  (!%p1218_p4), %s259_s6, 512, %s261_s5, %s250_s30, %s1076_s26, %s1076_s26, %s1077_s9  }
  0x2f   : > { %p305_p1 = scmp.lt.s32.totalorder %s1073_s28, 5 }
  0x31   : > { %p306_p6 = pnand %p776_p5, %p305_p1 }
  0x32   : > { %s311_s27 = sand.u32 (!%p306_p6), 1, %s1049_s22  }
  0x33   : > { %309 = sbr.rel (%p306_p6) target bundleno = 478 (0x1de), region = 40  ;;  %s777_s29 = sshll.u32 (!%p306_p6), %s311_s27, 5 }
  0x34   : > { %s312_s13 = scalar_lea.sflag (!%p306_p6), [#allocation4], %s311_s27  ;;  %s315_s14 = scalar_lea.vmem (!%p306_p6), [#allocation3], %s777_s29 }
  0x38   : > { %1024 = dma.done.wait (%p1186_p7), %s312_s13, 512  }
  0x39   : > { %1026 = vsyncadd (%p1186_p7), %s312_s13, 4294966784  ;;  %p377_p8 = scmp.lt.s32.totalorder %s1057_s24, 1  ;;  %v1078_v0 = vmov 0.0   ;;  %vm1079_vm0 = vmmov 0   ;;  %v420_v1 = vld [vmem:[%s315_s14 + $0x18] sm:$0xff]  ;;  %v419_v2 = vld [vmem:[%s315_s14 + $0x10] sm:$0xff] }
  0x3a   : > { %801 = vmatprep.subr.mxu0 %v1078_v0  ;;  %809 = vmatprep.mubr.msk.f32.mxu0 %vm1079_vm0, %v1078_v0  ;;  %v418_v3 = vld [vmem:[%s315_s14 + $0x8] sm:$0xff]  ;;  %v417_v4 = vld [vmem:[%s315_s14] sm:$0xff]  ;;  %vm421_vm1 = vcmask 261120   ;;  %p393_p7 = scmp.lt.s32.totalorder %s1061_s25, 1  ;;  %v1080_v7 = vmov 0   ;;  %vm589_vm2 = vcmask 64512  }
  0x3b   : > { %s378_s5 = scalar_select %p377_p8, %s1057_s24, 1  ;;  %812 = vmatprep.subr.mxu1 %v1078_v0  ;;  %814 = vmatprep.mubr.msk.f32.mxu1 %vm1079_vm0, %v1078_v0 }
  0x3c   : > { %802 = vmatpush3.msra.mxu0 %v420_v1  ;;  %924 = vset.pattern.permute.xlu0 %v1080_v7  ;;  %s394_s9 = scalar_select %p393_p7, %s1061_s25, 1 }
  0x3d   : > { %s779_s6 = sshll.u32 %s378_s5, 3  ;;  %803 = vmatprep.subr.mxu0 %v1078_v0  ;;  %s781_s26 = sshll.u32 %s378_s5, 1 }
  0x3e   : > { %s383_s30 = scalar_lea.vmem %s1310_s0, %s779_s6  ;;  %804 = vmatpush3.msra.mxu0 %v419_v2  ;;  %s390_s10 = scalar_lea.vmem %s1312_s2, %s779_s6 }
  0x3f   : > { %805 = vmatprep.subr.mxu0 %v1078_v0  ;;  %v416_v5 = vld [vmem:[%s383_s30] sm:$0xff]  ;;  %s399_s27 = sadd.s32 %s781_s26, %s394_s9  ;;  %s374_s6 = sand.u32 1, %s1037_s19  }
  0x40   : > { %806 = vmatpush3.msra.mxu0 %v418_v3  ;;  %v496_v6 = vld [vmem:[%s390_s10] sm:$0xff]  ;;  %s782_s29 = sshll.u32 %s399_s27, 3  ;;  %s778_s12 = sshll.u32 %s374_s6, 3 }
  0x41   : > { %807 = vmatprep.subr.mxu0 %v1078_v0  ;;  %813 = vmatpush3.xpose.msk.msra.mxu1 %vm421_vm1, %v496_v6  ;;  %s401_s8 = scalar_lea.vmem %s1313_s3, %s782_s29  ;;  %s789_s5 = sshll.u32 %s1057_s24, 1 }
  0x42   : > { %808 = vmatpush3.msra.mxu0 %v417_v4  ;;  %v498_v8 = vld [vmem:[%s401_s8] sm:$0xff]  ;;  %s411_s7 = scalar_lea.vmem %s1314_s4, %s399_s27  ;;  %s605_s10 = sadd.s32 %s1061_s25, %s789_s5 }
  0x43   : > { %810 = vmatmul.mubr.msk.f32.vlgmr.msra.gmra.mxu0 %vm421_vm1, %v416_v5  ;;  %501 = vperm.xlu0 %924, %v498_v8   ;;  %v787_v14 = vld [vmem:[%s411_s7] ss:$0 sm:$0xff]  ;;  %s790_s26 = sshll.u32 %s605_s10, 7  ;;  %s376_s9 = scalar_lea.vmem [#allocation6], %s778_s12 }
  0x44   : > { %s609_s29 = sshll.u32 %s376_s9, 4  ;;  %s1331_s8 = sld [smem:[#allocation13_spill]]  ;;  %s610_s29 = int_to_ptr.vmem [resolvable:$true] %s609_s29 }
  0x45   : > { %s592_s30 = scalar_lea.sflag [#allocation5], %s374_s6  ;;  %s953_s27 = scalar_lea.vmem %s610_s29, 128 }
  0x46   : > { %p954_p4 = scmp.ne.s32.totalorder %s610_s29, %s953_s27  ;;  %s1081_s25 = smov [#allocation6]  }
  0x47   : > { %s957_s5 = sshll.u32 %s1081_s25, 4  ;;  %s958_s5 = int_to_ptr.vmem [resolvable:$false] %s957_s5 }
  0x48   : > { %p955_p5 = pnand %p954_p4, %p1194_p12  ;;  %s959_s12 = scalar_lea.vmem %s958_s5, 256 }
  0x49   : > { %p960_p10 = scmp.lt.s32.totalorder %s610_s29, %s958_s5  ;;  %p961_p11 = scmp.lt.s32.totalorder %s959_s12, %s953_s27 }
  0x4a   : > { %s607_s24 = scalar_lea.hbm %s1331_s8, %s790_s26  ;;  %p956_p9 = pneg %p955_p5 }
  0x4b   : > { %p962_p13 = por %p961_p11, %p960_p10 }
  0x4d   : > { %p963_p0 = pnand %p962_p13, %p956_p9 }
  0xbe   : > { %v502_v12 = vpop.permute.xlu0 %501 }
 0x103   : > { %v491_v9 = vpop.f32.mrf.mxu0 }
 0x104   : > { %495 = vst.msk [vmem:[#allocation2] sm:$0xff] %vm421_vm1, %v491_v9 }
 0x105   : > { %v811_v10 = vpop.f32.mrf.mxu0 }
 0x10b   : > { %v497_v11 = vld [vmem:[#allocation2] sm:$0xff] }
 0x10c   : > { %815 = vmatmul.mubr.msk.f32.vlgmr.msra.gmra.mxu1 %vm421_vm1, %v497_v11 }
 0x1cc   : > { %v577_v13 = vpop.f32.mrf.mxu1 }
 0x1cd   : > { %v578_v15 = vadd.f32 %v577_v13, %v502_v12 }
 0x1ce   : > { %v816_v16 = vpop.f32.mrf.mxu1 }
 0x1cf   : > { %v588_v17 = vadd.f32 %v787_v14, %v578_v15 }
 0x1d1   : > { %590 = vst.msk [vmem:[%s376_s9] sm:$0xff] %vm589_vm2, %v588_v17 }
 0x1d2   : > { %966 = shalt.err (!%p963_p0)
}
 0x1d3   : > { %s967_s11 = scalar_lea.hbm %s607_s24, 128  ;;  %s971_s10 = scalar_lea.hbm %s1331_s8, 512 }
 0x1d4   : > { %p968_p3 = scmp.ne.s32.totalorder %s607_s24, %s967_s11  ;;  %p972_p8 = scmp.lt.s32.totalorder %s607_s24, %s1331_s8 }
 0x1d5   : > { %p973_p7 = scmp.lt.s32.totalorder %s971_s10, %s967_s11 }
 0x1d6   : > { %p969_p1 = pnand %p968_p3, %p1194_p12 }
 0x1d7   : > { %p974_p4 = por %p973_p7, %p972_p8 }
 0x1d8   : > { %p970_p6 = pneg %p969_p1 }
 0x1da   : > { %p975_p5 = pnand %p974_p4, %p970_p6 }
 0x1dc   : > { %978 = shalt.err (!%p975_p5)
}
 0x1dd   : > { %819 = dma.vmem_to_hbm [thread:$0]  (%p1194_p12), %s610_s29, 128, %s607_s24, %s592_s30  }
 0x1de PF: > { %p830_p9 = scmp.ge.s32.totalorder %s1073_s28, 2  ;;  %s621_s13 = sand.u32 1, %s1033_s18  }
 0x1df   : > { %s622_s14 = scalar_lea.sflag [#allocation5], %s621_s13 }
 0x1e0   : > { %p826_p10 = pnand %p830_p9, %p1207_p2 }
 0x1e2   : > { %p827_p11 = pneg %p826_p10 }
 0x1e4   : > { %1028 = dma.done.wait (%p827_p11), %s622_s14, 128  }
 0x1e5   : > { %1030 = vsyncadd (%p827_p11), %s622_s14, 4294967168  ;;  %s21_s28 = sadd.s32 1, %s1073_s28   ;;  %s1332_s24 = sld [smem:[#allocation9_spill]] }
 0x1e6   : > { %p18_p13 = scmp.ge.s32.totalorder %s21_s28, 6   ;;  %s1333_s25 = sld [smem:[#allocation10_spill]] }
 0x1e7   : > { %s1334_s26 = sld [smem:[#allocation11_spill]]  ;;  %s1336_s18 = smov %s1037_s19 }
 0x1e8   : > { %s1335_s27 = sld [smem:[#allocation12_spill]]  ;;  %s1337_s19 = smov %s1041_s20 }
 0x1e9   : > { %s1338_s20 = smov %s1202_s17  ;;  %s1339_s21 = smov %s1049_s22 }
 0x1ea   : > { %s1340_s22 = smov %s1053_s23  ;;  %s1341_s23 = smov %s1199_s16 }
 0x1eb   :  { %20 = sbr.rel (!%p18_p13) target bundleno = 11 (0xb), region = 101 }
 0x1f0   :  { %627 = vsyncpa [#allocation4], 1 }
 0x1f1   :  { %629 = vsyncpa [#allocation4 + $0x1], 1 }
 0x1f2   :  { %630 = vsyncpa [#allocation5], 1 }
 0x1f3   :  { %632 = vsyncpa [#allocation5 + $0x1], 1 }

</bundles_post_ra>
